<compile_context>
chip_gen: v7x
topology: tpu7x:2x2x1
jax: 0.10.0
libtpu: 0.0.40
codegen_flags: <defaults>
</compile_context>

<pallas_src>
import functools

import jax
import jax.numpy as jnp
from jax.experimental import pallas as pl
from jax.experimental.pallas import tpu as pltpu

HIDDEN = 64
FUSED = 2 * HIDDEN  # 128: actor tower in lanes [0:64), critic tower in [64:128)
_HI = jax.lax.Precision.HIGHEST  # full f32 MXU precision (matches fp32 torch math)


def _policy_kernel(x_ref, w1_ref, w23_ref, b_ref, out_ref):
    x = x_ref[...]
    b = b_ref[...]  # (8, 128) bias slab: rows 0/1/2 = layer1 / layer2 / layer3

    # Layer 1 (fused actor|critic): (B, S) @ (S, 128)
    h = jnp.tanh(
        jnp.dot(x, w1_ref[...], precision=_HI, preferred_element_type=jnp.float32)
        + b[0:1, :]
    )
    # Layer 2 (block-diagonal): (B, 128) @ (128, 128)
    h = jnp.tanh(
        jnp.dot(h, w23_ref[0], precision=_HI, preferred_element_type=jnp.float32)
        + b[1:2, :]
    )
    # Layer 3 (block-diagonal, zero-padded to 128 lanes):
    # cols [0:A) = action_mean, col A = state_value, remaining cols are 0.
    out_ref[...] = (
        jnp.dot(h, w23_ref[1], precision=_HI, preferred_element_type=jnp.float32)
        + b[2:3, :]
    )


@functools.partial(jax.jit, static_argnames=("action_space",))
def policy_forward(x, packed, *, action_space):
    """Returns (action_mean, sigma, state_value).

    PyTorch's forward returns (Normal(action_mean, sigma), state_value); here we
    return the distribution parameters directly.
    """
    B = x.shape[0]
    vmem = pl.BlockSpec(memory_space=pltpu.MemorySpace.VMEM)

    out = pl.pallas_call(
        _policy_kernel,
        out_shape=jax.ShapeDtypeStruct((B, FUSED), jnp.float32),
        in_specs=[vmem, vmem, vmem, vmem],
        out_specs=vmem,
    )(x, packed["w1"], packed["w23"], packed["b"])

    action_mean = out[:, :action_space]
    state_value = out[:, action_space:action_space + 1]
    # sigma does not depend on x -> hoisted out of the kernel.
    sigma = jax.nn.softplus(packed["sigma"])
    return action_mean, sigma, state_value


def init_params(key, state_space, action_space, hidden=HIDDEN, init_sigma=0.5):
    """Mirrors Policy.init_weights(): weights ~ N(0,1), biases = 0, sigma = 0.5.

    Weights are stored as (in_features, out_features) == torch weight.T so the
    kernel computes x @ W + b (identical math to torch's x @ W_pt.T + b).
    """
    ks = jax.random.split(key, 6)

    def lin(k, fan_in, fan_out):
        w = jax.random.normal(k, (fan_in, fan_out), dtype=jnp.float32)
        b = jnp.zeros((fan_out,), dtype=jnp.float32)
        return w, b

    w1a, b1a = lin(ks[0], state_space, hidden)
    w2a, b2a = lin(ks[1], hidden, hidden)
    w3a, b3a = lin(ks[2], hidden, action_space)
    w1c, b1c = lin(ks[3], state_space, hidden)
    w2c, b2c = lin(ks[4], hidden, hidden)
    w3c, b3c = lin(ks[5], hidden, 1)
    sigma = jnp.full((action_space,), init_sigma, dtype=jnp.float32)

    return dict(
        w1a=w1a, b1a=b1a, w2a=w2a, b2a=b2a, w3a=w3a, b3a=b3a, sigma=sigma,
        w1c=w1c, b1c=b1c, w2c=w2c, b2c=b2c, w3c=w3c, b3c=b3c,
    )


def pack_params(p, state_space, action_space, hidden=HIDDEN):
    """Build the fused/packed parameter slabs ONCE on the host."""
    F = 2 * hidden
    assert action_space + 1 <= F, "fused output width must hold mean and value"

    # Layer 1: actor and critic side by side -> (S, 128).
    w1 = jnp.concatenate([p["w1a"], p["w1c"]], axis=1)

    # Layer 2: block-diagonal -> (128, 128). Off-diagonal blocks exactly zero.
    w2 = jnp.zeros((F, F), jnp.float32)
    w2 = w2.at[:hidden, :hidden].set(p["w2a"])
    w2 = w2.at[hidden:, hidden:].set(p["w2c"])

    # Layer 3: block-diagonal, zero-padded to 128 output lanes.
    w3 = jnp.zeros((F, F), jnp.float32)
    w3 = w3.at[:hidden, :action_space].set(p["w3a"])
    w3 = w3.at[hidden:, action_space:action_space + 1].set(p["w3c"])

    w23 = jnp.stack([w2, w3], axis=0)  # (2, 128, 128) single weight slab

    # Bias slab padded to a full (8, 128) sublane tile: rows 0/1/2 used.
    b = jnp.zeros((8, F), jnp.float32)
    b = b.at[0, :hidden].set(p["b1a"]).at[0, hidden:].set(p["b1c"])
    b = b.at[1, :hidden].set(p["b2a"]).at[1, hidden:].set(p["b2c"])
    b = b.at[2, :action_space].set(p["b3a"])
    b = b.at[2, action_space].set(p["b3c"][0])

    return dict(w1=w1, w23=w23, b=b, sigma=p["sigma"])


def _reference_forward(x, p):
    """Pure-JAX reference on the UNPACKED parameters."""
    h = jnp.tanh(jnp.dot(x, p["w1a"], precision=_HI) + p["b1a"])
    h = jnp.tanh(jnp.dot(h, p["w2a"], precision=_HI) + p["b2a"])
    mean = jnp.dot(h, p["w3a"], precision=_HI) + p["b3a"]
    sigma = jax.nn.softplus(p["sigma"])
    c = jnp.tanh(jnp.dot(x, p["w1c"], precision=_HI) + p["b1c"])
    c = jnp.tanh(jnp.dot(c, p["w2c"], precision=_HI) + p["b2c"])
    value = jnp.dot(c, p["w3c"], precision=_HI) + p["b3c"]
    return mean, sigma, value


if __name__ == "__main__":
    key = jax.random.PRNGKey(0)
    k_param, k_x = jax.random.split(key)

    batch = 8
    state_space = 16
    action_space = 4

    params = init_params(k_param, state_space, action_space)
    packed = pack_params(params, state_space, action_space)
    x = jax.random.normal(k_x, (batch, state_space), dtype=jnp.float32)

    mean, sigma, value = policy_forward(x, packed, action_space=action_space)
    jax.block_until_ready((mean, sigma, value))

    # Cross-check against the pure-JAX reference on the unpacked params.
    ref_mean, ref_sigma, ref_value = _reference_forward(x, params)
    assert mean.shape == (batch, action_space)
    assert sigma.shape == (action_space,)
    assert value.shape == (batch, 1)
    assert jnp.allclose(mean, ref_mean, atol=1e-3, rtol=1e-3)
    assert jnp.allclose(sigma, ref_sigma, atol=1e-6, rtol=1e-6)
    assert jnp.allclose(value, ref_value, atol=1e-3, rtol=1e-3)

    # TODO(synk): torch.distributions.Normal object construction has no Pallas
    # equivalent; the kernel returns the distribution parameters (mean, sigma).
    print("KERNEL_OK")
</pallas_src>

<mosaic_0001>
module attributes {stable_mosaic.version = 11 : i64} {
  func.func @_policy_kernel(%arg0: memref<8x16xf32, #tpu.memory_space<vmem>>, %arg1: memref<16x128xf32, #tpu.memory_space<vmem>>, %arg2: memref<2x128x128xf32, #tpu.memory_space<vmem>>, %arg3: memref<8x128xf32, #tpu.memory_space<vmem>>, %arg4: memref<8x128xf32, #tpu.memory_space<vmem>>) attributes {dimension_semantics = [], scalar_prefetch = 0 : i64, scratch_operands = 0 : i64, tpu.core_type = #tpu.core_type<tc>} {
    %c0 = arith.constant 0 : index
    %c0_0 = arith.constant 0 : index
    %0 = vector.load %arg0[%c0, %c0_0] : memref<8x16xf32, #tpu.memory_space<vmem>>, vector<8x16xf32>
    %c0_1 = arith.constant 0 : index
    %c0_2 = arith.constant 0 : index
    %1 = vector.load %arg3[%c0_1, %c0_2] : memref<8x128xf32, #tpu.memory_space<vmem>>, vector<8x128xf32>
    %c0_3 = arith.constant 0 : index
    %c0_4 = arith.constant 0 : index
    %2 = vector.load %arg1[%c0_3, %c0_4] : memref<16x128xf32, #tpu.memory_space<vmem>>, vector<16x128xf32>
    %cst = arith.constant dense<0.000000e+00> : vector<8x128xf32>
    %3 = tpu.matmul %0, %2, %cst {dimension_numbers = #tpu.dot_dimension_numbers<[1], [0], [0], [1], [0, 0, 1, 1], [], []>, precision = #tpu.contract_precision<fp32>} : vector<8x16xf32>, vector<16x128xf32>, vector<8x128xf32> -> vector<8x128xf32>
    %4 = vector.extract_strided_slice %1 {offsets = [0, 0], sizes = [1, 128], strides = [1, 1]} : vector<8x128xf32> to vector<1x128xf32>
    %5 = vector.broadcast %4 : vector<1x128xf32> to vector<8x128xf32>
    %6 = arith.addf %3, %5 : vector<8x128xf32>
    %7 = math.tanh %6 : vector<8x128xf32>
    %c0_5 = arith.constant 0 : index
    %c0_6 = arith.constant 0 : index
    %c0_7 = arith.constant 0 : index
    %8 = vector.load %arg2[%c0_5, %c0_6, %c0_7] : memref<2x128x128xf32, #tpu.memory_space<vmem>>, vector<1x128x128xf32>
    %9 = vector.shape_cast %8 : vector<1x128x128xf32> to vector<128x128xf32>
    %cst_8 = arith.constant dense<0.000000e+00> : vector<8x128xf32>
    %10 = tpu.matmul %7, %9, %cst_8 {dimension_numbers = #tpu.dot_dimension_numbers<[1], [0], [0], [1], [0, 0, 1, 1], [], []>, precision = #tpu.contract_precision<fp32>} : vector<8x128xf32>, vector<128x128xf32>, vector<8x128xf32> -> vector<8x128xf32>
    %11 = vector.extract_strided_slice %1 {offsets = [1, 0], sizes = [1, 128], strides = [1, 1]} : vector<8x128xf32> to vector<1x128xf32>
    %12 = vector.broadcast %11 : vector<1x128xf32> to vector<8x128xf32>
    %13 = arith.addf %10, %12 : vector<8x128xf32>
    %14 = math.tanh %13 : vector<8x128xf32>
    %c1 = arith.constant 1 : index
    %c0_9 = arith.constant 0 : index
    %c0_10 = arith.constant 0 : index
    %15 = vector.load %arg2[%c1, %c0_9, %c0_10] : memref<2x128x128xf32, #tpu.memory_space<vmem>>, vector<1x128x128xf32>
    %16 = vector.shape_cast %15 : vector<1x128x128xf32> to vector<128x128xf32>
    %cst_11 = arith.constant dense<0.000000e+00> : vector<8x128xf32>
    %17 = tpu.matmul %14, %16, %cst_11 {dimension_numbers = #tpu.dot_dimension_numbers<[1], [0], [0], [1], [0, 0, 1, 1], [], []>, precision = #tpu.contract_precision<fp32>} : vector<8x128xf32>, vector<128x128xf32>, vector<8x128xf32> -> vector<8x128xf32>
    %18 = vector.extract_strided_slice %1 {offsets = [2, 0], sizes = [1, 128], strides = [1, 1]} : vector<8x128xf32> to vector<1x128xf32>
    %19 = vector.broadcast %18 : vector<1x128xf32> to vector<8x128xf32>
    %20 = arith.addf %17, %19 : vector<8x128xf32>
    %c0_12 = arith.constant 0 : index
    %c0_13 = arith.constant 0 : index
    %21 = vector.load %arg4[%c0_12, %c0_13] : memref<8x128xf32, #tpu.memory_space<vmem>>, vector<8x128xf32>
    tpu.vector_store %arg4[%c0_12, %c0_13], %20 {strides = array<i32>} : memref<8x128xf32, #tpu.memory_space<vmem>>, vector<8x128xf32>,
    return
  }
}

</mosaic_0001>

<bundles_post_ra>
// kernel: policy_forward.1
= control target key start
LH: loop header
LB: loop body
LE: loop exit
PB: predicated region body
PF: predicated region fallthrough
CT: control target
= control target key end

     0   :  { %9 = vsyncpa [#allocation3], 0  ;;  %s3614_s0 = inlined_call_operand.hbm [shape: f32[8,16], index: 0, kind: input, shape index: {}]   ;;  %s3615_s1 = inlined_call_operand.hbm [shape: f32[16,128], index: 1, kind: input, shape index: {}]   ;;  %s3616_s2 = inlined_call_operand.hbm [shape: f32[2,128,128], index: 2, kind: input, shape index: {}]   ;;  %s3617_s3 = inlined_call_operand.vmem [shape: f32[8,128], index: 3, kind: input, shape index: {}]   ;;  %s3618_s4 = inlined_call_operand.vmem [shape: f32[8,128], index: 4, kind: output, shape index: {}]  }
   0x1   :  { %10 = vsyncpa [#allocation5], 0  ;;  %s2963_s15 = smov [#allocation4]   ;;  %s2893_s19 = scalar_lea.hbm %s3615_s1, 256 }
   0x2   :  { %s26_s16 = sshll.u32 %s2963_s15, 4  ;;  %p2894_p0 = scmp.ne.s32.totalorder %s3615_s1, %s2893_s19  ;;  %s27_s16 = int_to_ptr.vmem [resolvable:$true] %s26_s16 }
   0x3   :  { %p2897_p1 = scmp.lt.u32.totalorder %s2893_s19, %s3615_s1 }
   0x5   :  { %p2899_p2 = pnand %p2897_p1, %p2894_p0 }
   0x7   :  { %2902 = shalt.err (!%p2899_p2)
}
   0x8   :  { %s2903_s24 = scalar_lea.vmem %s27_s16, 256  ;;  %p2908_p4 = scmp.lt.s32.totalorder %s27_s16, %s27_s16 }
   0x9   :  { %p2904_p3 = scmp.ne.s32.totalorder %s27_s16, %s2903_s24  ;;  %p2909_p5 = scmp.lt.s32.totalorder %s2903_s24, %s2903_s24 }
   0xb   :  { %p2910_p6 = por %p2909_p5, %p2908_p4 }
   0xd   :  { %p2911_p7 = pnand %p2910_p6, %p2904_p3 }
   0xf   :  { %2914 = shalt.err (!%p2911_p7)
}
  0x10   :  { %s2964_s25 = smov 128   ;;  %s2965_s26 = smov 8  }
  0x11   :  { %32 = dma.hbm_to_vmem [thread:$0]  %s3615_s1, 256, %s27_s16, [#allocation5], %s2964_s25, %s2964_s25, %s2965_s26  }
  0x12   :  { %s2966_s29 = smov [#allocation2]   ;;  %s2967_s5 = smov [#allocation6]  }
  0x13   :  { %s17_s30 = sshll.u32 %s2966_s29, 4  ;;  %s38_s6 = sshll.u32 %s2967_s5, 4  ;;  %s18_s30 = int_to_ptr.vmem [resolvable:$true] %s17_s30  ;;  %s39_s6 = int_to_ptr.vmem [resolvable:$true] %s38_s6 }
  0x14   :  { %s2915_s9 = scalar_lea.hbm %s3614_s0, 128 }
  0x15   :  { %p2916_p8 = scmp.ne.s32.totalorder %s3614_s0, %s2915_s9  ;;  %p2919_p9 = scmp.lt.u32.totalorder %s2915_s9, %s3614_s0 }
  0x17   :  { %p2921_p10 = pnand %p2919_p9, %p2916_p8 }
  0x19   :  { %2924 = shalt.err (!%p2921_p10)
}
  0x1a   :  { %s2925_s1 = scalar_lea.vmem %s18_s30, 128  ;;  %p2930_p12 = scmp.lt.s32.totalorder %s18_s30, %s18_s30 }
  0x1b   :  { %p2926_p11 = scmp.ne.s32.totalorder %s18_s30, %s2925_s1  ;;  %p2931_p13 = scmp.lt.s32.totalorder %s2925_s1, %s2925_s1 }
  0x1d   :  { %p2932_p0 = por %p2931_p13, %p2930_p12 }
  0x1f   :  { %p2933_p1 = pnand %p2932_p0, %p2926_p11 }
  0x21   :  { %2936 = shalt.err (!%p2933_p1)
}
  0x22   :  { %20 = dma.hbm_to_vmem [thread:$0]  %s3614_s0, 128, %s18_s30, [#allocation3]  }
  0x23   :  { %s2937_s18 = scalar_lea.hbm %s3616_s2, 4096 }
  0x24   :  { %p2938_p2 = scmp.ne.s32.totalorder %s3616_s2, %s2937_s18  ;;  %p2941_p3 = scmp.lt.u32.totalorder %s2937_s18, %s3616_s2 }
  0x26   :  { %p2943_p4 = pnand %p2941_p3, %p2938_p2 }
  0x28   :  { %2946 = shalt.err (!%p2943_p4)
}
  0x29   :  { %s2947_s23 = scalar_lea.vmem %s39_s6, 4096  ;;  %p2952_p6 = scmp.lt.s32.totalorder %s39_s6, %s39_s6 }
  0x2a   :  { %p2948_p5 = scmp.ne.s32.totalorder %s39_s6, %s2947_s23  ;;  %p2953_p7 = scmp.lt.s32.totalorder %s2947_s23, %s2947_s23 }
  0x2c   :  { %p2954_p8 = por %p2953_p7, %p2952_p6 }
  0x2e   :  { %p2955_p9 = pnand %p2954_p8, %p2948_p5 }
  0x30   :  { %2958 = shalt.err (!%p2955_p9)
}
  0x31   :  { %44 = dma.hbm_to_vmem [thread:$0]  %s3616_s2, 4096, %s39_s6, [#allocation5], %s2964_s25, %s2964_s25, %s2965_s26  }
  0x32   :  { %2959 = dma.done.wait [#allocation3], 128  }
  0x33   :  { %2960 = vsyncadd [#allocation3], 4294967168 }
  0x34   :  { %2961 = dma.done.wait [#allocation5], 4352  }
  0x35   :  { %2962 = vsyncadd [#allocation5], 4294962944  ;;  %v2968_v0 = vmov 0.0|0.0   ;;  %vm2969_vm0 = vmmov 0   ;;  %v2970_v1 = vmov 0.0   ;;  %vm64_vm1 = vcmask 130048  }
  0x36   :  { %2552 = vmatprep.subr.bf16.mxu0 %v2968_v0  ;;  %2106 = vmatprep.mubr.msk.f32.mxu0 %vm2969_vm0, %v2970_v1  ;;  %v58_v2 = vld [vmem:[#allocation4] sm:$0xff]  ;;  %v59_v3 = vld [vmem:[#allocation4 + $0x8] sm:$0xff]  ;;  %v56_v4 = vld [vmem:[#allocation2] sm:$0xff] }
  0x37   :  { %2543 = vmatprep.subr.bf16.mxu1 %v2968_v0  ;;  %2085 = vmatprep.mubr.msk.f32.mxu1 %vm2969_vm0, %v2970_v1  ;;  %v69_v5 = vand.u32 4294901760, %v58_v2  ;;  %v72_v6 = vand.u32 4294901760, %v59_v3  ;;  %v66_v7 = vsel %vm64_vm1, %v56_v4, 0  ;;  %v528_v8 = vld [vmem:[#allocation6] sm:$0xff]  ;;  %v529_v9 = vld [vmem:[#allocation6 + $0x8] sm:$0xff]  ;;  %v530_v32 = vld [vmem:[#allocation6 + $0x10] sm:$0xff] }
  0x38   :  { %v135_v10 = vand.u32 4294901760, %v66_v7  ;;  %v549_v11 = vand.u32 4294901760, %v528_v8  ;;  %v552_v12 = vand.u32 4294901760, %v529_v9  ;;  %v531_v33 = vld [vmem:[#allocation6 + $0x18] sm:$0xff]  ;;  %v555_v34 = vand.u32 4294901760, %v530_v32  ;;  %v532_v39 = vld [vmem:[#allocation6 + $0x20] sm:$0xff] }
  0x39   :  { %v2544_v13 = vpack.c.bf16 %v72_v6, %v69_v5  ;;  %v147_v14 = vsub.f32 %v58_v2, %v69_v5  ;;  %v154_v15 = vsub.f32 %v59_v3, %v72_v6  ;;  %v558_v35 = vand.u32 4294901760, %v531_v33  ;;  %v533_v40 = vld [vmem:[#allocation6 + $0x28] sm:$0xff]  ;;  %v534_v44 = vld [vmem:[#allocation6 + $0x30] sm:$0xff]  ;;  %v535_v45 = vld [vmem:[#allocation6 + $0x38] sm:$0xff] }
  0x3a   :  { %v136_v16 = vsub.f32 %v66_v7, %v135_v10  ;;  %v3044_v17 = vsub.f32 %v528_v8, %v549_v11  ;;  %v3046_v18 = vsub.f32 %v529_v9, %v552_v12  ;;  %v3062_v31 = vpack.c.bf16 %v552_v12, %v549_v11  ;;  %v536_v49 = vld [vmem:[#allocation6 + $0x40] sm:$0xff]  ;;  %v537_v50 = vld [vmem:[#allocation6 + $0x48] sm:$0xff]  ;;  %v538_v54 = vld [vmem:[#allocation6 + $0x50] sm:$0xff] }
  0x3b   :  { %2554 = vmatpush3.bf16.msra.mxu0 %v2544_v13  ;;  %2545 = vmatpush3.bf16.msra.mxu1 %v2544_v13  ;;  %v148_v19 = vand.u32 4294901760, %v147_v14  ;;  %v155_v20 = vand.u32 4294901760, %v154_v15  ;;  %v2550_v30 = vpack.c.bf16 %v154_v15, %v147_v14  ;;  %v3070_v36 = vpack.c.bf16 %v558_v35, %v555_v34  ;;  %v539_v55 = vld [vmem:[#allocation6 + $0x58] sm:$0xff]  ;;  %v540_v59 = vld [vmem:[#allocation6 + $0x60] sm:$0xff]  ;;  %v541_v60 = vld [vmem:[#allocation6 + $0x68] sm:$0xff] }
  0x3c   :  { %v137_v21 = vand.u32 4294901760, %v136_v16  ;;  %2546 = vmatprep.subr.bf16.mxu1 %v2968_v0  ;;  %2555 = vmatprep.subr.bf16.mxu0 %v2968_v0  ;;  %v3072_v37 = vsub.f32 %v530_v32, %v555_v34  ;;  %v3074_v38 = vsub.f32 %v531_v33, %v558_v35  ;;  %v561_v41 = vand.u32 4294901760, %v532_v39  ;;  %v542_v5 = vld [vmem:[#allocation6 + $0x70] sm:$0xff]  ;;  %v543_v6 = vld [vmem:[#allocation6 + $0x78] sm:$0xff] }
  0x3d   :  { %v149_v22 = vsub.f32 %v147_v14, %v148_v19  ;;  %v156_v23 = vsub.f32 %v154_v15, %v155_v20  ;;  %v2556_v24 = vpack.c.bf16 %v155_v20, %v148_v19  ;;  %v564_v42 = vand.u32 4294901760, %v533_v40 }
  0x3e   :  { %2107 = vmatmul.mubr.f32.vlgmr.msra.gmra.mrb[0].mxu0 %v137_v21  ;;  %v138_v25 = vsub.f32 %v136_v16, %v137_v21  ;;  %v567_v46 = vand.u32 4294901760, %v534_v44  ;;  %v570_v47 = vand.u32 4294901760, %v535_v45  ;;  %v573_v51 = vand.u32 4294901760, %v536_v49 }
  0x3f   :  { %v150_v26 = vand.u32 4294901760, %v149_v22  ;;  %v157_v27 = vand.u32 4294901760, %v156_v23  ;;  %2557 = vmatpush3.bf16.msra.mxu0 %v2556_v24  ;;  %2113 = vmatprep.mubr.msk.f32.mxu0 %vm2969_vm0, %v2970_v1  ;;  %v3078_v43 = vpack.c.bf16 %v564_v42, %v561_v41  ;;  %v576_v52 = vand.u32 4294901760, %v537_v50 }
  0x40   :  { %v139_v28 = vand.u32 4294901760, %v138_v25  ;;  %2558 = vmatprep.subr.bf16.mxu0 %v2968_v0  ;;  %v3082_v48 = vpack.c.bf16 %v570_v47, %v567_v46  ;;  %v579_v56 = vand.u32 4294901760, %v538_v54  ;;  %v582_v57 = vand.u32 4294901760, %v539_v55 }
  0x41   :  { %v2547_v29 = vpack.c.bf16 %v157_v27, %v150_v26  ;;  %v3086_v53 = vpack.c.bf16 %v576_v52, %v573_v51  ;;  %v585_v61 = vand.u32 4294901760, %v540_v59  ;;  %v588_v62 = vand.u32 4294901760, %v541_v60 }
  0x42   :  { %2086 = vmatmul.mubr.f32.vlgmr.msra.gmra.mrb[0].mxu1 %v139_v28  ;;  %v3090_v58 = vpack.c.bf16 %v582_v57, %v579_v56  ;;  %v3094_v63 = vsub.f32 %v532_v39, %v561_v41  ;;  %v3096_v2 = vsub.f32 %v533_v40, %v564_v42  ;;  %v3098_v3 = vsub.f32 %v534_v44, %v567_v46 }
  0x43   :  { %2548 = vmatpush3.bf16.msra.mxu1 %v2547_v29  ;;  %2092 = vmatprep.mubr.msk.f32.mxu1 %vm2969_vm0, %v2970_v1  ;;  %v3100_v4 = vsub.f32 %v535_v45, %v570_v47  ;;  %v3102_v7 = vsub.f32 %v536_v49, %v573_v51  ;;  %v3104_v8 = vsub.f32 %v537_v50, %v576_v52  ;;  %v591_v14 = vand.u32 4294901760, %v542_v5 }
  0x44   :  { %2549 = vmatprep.subr.bf16.mxu1 %v2968_v0  ;;  %v3106_v9 = vsub.f32 %v538_v54, %v579_v56  ;;  %v3110_v11 = vpack.c.bf16 %v588_v62, %v585_v61  ;;  %v3112_v12 = vsub.f32 %v540_v59, %v585_v61  ;;  %v594_v15 = vand.u32 4294901760, %v543_v6 }
  0x45   :  { %v649_v19 = vand.u32 4294901760, %v3046_v18  ;;  %v3119_v20 = vsub.f32 %v542_v5, %v591_v14  ;;  %v656_v27 = vand.u32 4294901760, %v3072_v37  ;;  %v663_v28 = vand.u32 4294901760, %v3074_v38 }
  0x46   :  { %2114 = vmatmul.mubr.f32.vlgmr.msra.gmra.mrb[0].mxu0 %v135_v10  ;;  %v3122_v21 = vpack.c.bf16 %v594_v15, %v591_v14  ;;  %v3124_v22 = vsub.f32 %v543_v6, %v594_v15  ;;  %v670_v35 = vand.u32 4294901760, %v3094_v63  ;;  %v677_v39 = vand.u32 4294901760, %v3096_v2 }
  0x47   :  { %2560 = vmatpush3.bf16.msra.mxu0 %v2544_v13  ;;  %2120 = vmatprep.mubr.msk.f32.mxu0 %vm2969_vm0, %v2970_v1  ;;  %v3114_v13 = vsub.f32 %v541_v60, %v588_v62  ;;  %v650_v24 = vsub.f32 %v3046_v18, %v649_v19  ;;  %v664_v32 = vsub.f32 %v3074_v38, %v663_v28  ;;  %v684_v46 = vand.u32 4294901760, %v3098_v3 }
  0x48   :  { %2705 = vmatprep.subr.bf16.mxu0 %v2968_v0  ;;  %v671_v41 = vsub.f32 %v3094_v63, %v670_v35  ;;  %v678_v42 = vsub.f32 %v3096_v2, %v677_v39  ;;  %v3627_v47 = vand.u32 4294901760, %v3100_v4  ;;  %v3625_v56 = vand.u32 4294901760, %v3104_v8 }
  0x49   :  { %v651_v26 = vand.u32 4294901760, %v650_v24  ;;  %v665_v34 = vand.u32 4294901760, %v664_v32  ;;  %v685_v50 = vsub.f32 %v3098_v3, %v684_v46  ;;  %v3624_v5 = vand.u32 4294901760, %v3106_v9 }
  0x4a   :  { %2093 = vmatmul.mubr.f32.vlgmr.msra.gmra.mrb[0].mxu1 %v135_v10  ;;  %v672_v44 = vand.u32 4294901760, %v671_v41  ;;  %v679_v45 = vand.u32 4294901760, %v678_v42  ;;  %v692_v51 = vsub.f32 %v3100_v4, %v3627_v47  ;;  %v706_v60 = vsub.f32 %v3104_v8, %v3625_v56 }
  0x4b   :  { %2551 = vmatpush3.bf16.msra.mxu1 %v2550_v30  ;;  %2099 = vmatprep.mubr.msk.f32.mxu1 %vm2969_vm0, %v2970_v1  ;;  %v657_v30 = vsub.f32 %v3072_v37, %v656_v27  ;;  %v686_v52 = vand.u32 4294901760, %v685_v50  ;;  %v713_v15 = vsub.f32 %v3106_v9, %v3624_v5 }
  0x4c   :  { %2561 = vmatprep.subr.bf16.mxu1 %v2968_v0  ;;  %v3156_v49 = vpack.c.bf16 %v679_v45, %v672_v44  ;;  %v693_v54 = vand.u32 4294901760, %v692_v51  ;;  %v707_v62 = vand.u32 4294901760, %v706_v60  ;;  %v3620_v44 = vand.u32 4294901760, %v3119_v20 }
  0x4d   :  { %v658_v33 = vand.u32 4294901760, %v657_v30  ;;  %v714_v24 = vand.u32 4294901760, %v713_v15  ;;  %v3621_v30 = vand.u32 4294901760, %v3114_v13  ;;  %v3619_v45 = vand.u32 4294901760, %v3124_v22 }
  0x4e   :  { %2121 = vmatmul.mubr.f32.vlgmr.msra.gmra.mrb[0].mxu0 %v135_v10  ;;  %v3108_v10 = vsub.f32 %v539_v55, %v582_v57  ;;  %v3626_v55 = vand.u32 4294901760, %v3102_v7  ;;  %v2595_v57 = vpack.c.bf16 %v693_v54, %v686_v52  ;;  %v741_v51 = vsub.f32 %v3119_v20, %v3620_v44 }
  0x4f   :  { %2365 = vmatprep.mubr.msk.f32.mxu0 %vm2969_vm0, %v2970_v1  ;;  %v3146_v40 = vpack.c.bf16 %v665_v34, %v658_v33  ;;  %v734_v34 = vsub.f32 %v3114_v13, %v3621_v30  ;;  %v748_v52 = vsub.f32 %v3124_v22, %v3619_v45  ;;  %v2616_v15 = vpack.c.bf16 %v3096_v2, %v3094_v63 }
  0x50   :  { %v699_v59 = vsub.f32 %v3102_v7, %v3626_v55  ;;  %v3623_v6 = vand.u32 4294901760, %v3108_v10  ;;  %v742_v54 = vand.u32 4294901760, %v741_v51  ;;  %v3638_v63 = vand.u32 4294901760, %v3106_v9 }
  0x51   :  { %v735_v42 = vand.u32 4294901760, %v734_v34  ;;  %v2631_v34 = vpack.c.bf16 %v3124_v22, %v3119_v20  ;;  %v3639_v2 = vand.u32 4294901760, %v3108_v10 }
  0x52   :  { %2100 = vmatmul.mubr.f32.vlgmr.msra.gmra.mrb[0].mxu1 %v136_v16  ;;  %v642_v16 = vand.u32 4294901760, %v3044_v17  ;;  %v700_v61 = vand.u32 4294901760, %v699_v59  ;;  %v749_v59 = vand.u32 4294901760, %v748_v52  ;;  %v3218_v52 = vld [vmem:[%s3617_s3] sm:$0xff] }
  0x53   :  { %2563 = vmatpush3.bf16.msra.mxu1 %v3062_v31  ;;  %2155 = vmatprep.mubr.msk.f32.mxu1 %vm2969_vm0, %v2970_v1 }
  0x54   :  { %2564 = vmatprep.subr.bf16.mxu1 %v2968_v0  ;;  %v643_v23 = vsub.f32 %v3044_v17, %v642_v16  ;;  %v2598_v14 = vpack.c.bf16 %v707_v62, %v700_v61  ;;  %v2607_v60 = vpack.c.bf16 %v749_v59, %v742_v54  ;;  %v2610_v61 = vpack.c.bf16 %v3046_v18, %v3044_v17 }
  0x55   :  { %v2613_v62 = vpack.c.bf16 %v3074_v38, %v3072_v37  ;;  %v2664_v17 = vpack.c.bf16 %v677_v39, %v670_v35  ;;  %v3635_v18 = vand.u32 4294901760, %v3100_v4  ;;  %v3636_v38 = vand.u32 4294901760, %v3102_v7 }
  0x56   :  { %v644_v25 = vand.u32 4294901760, %v643_v23  ;;  %v720_v23 = vsub.f32 %v3108_v10, %v3623_v6 }
  0x57   :  { %2566 = vmatpush3.bf16.msra.mxu1 %v3070_v36  ;;  %v2667_v37 = vpack.c.bf16 %v3635_v18, %v684_v46  ;;  %v1201_v46 = vld [vmem:[#allocation6 + $0xd0] sm:$0xff] }
  0x58   :  { %2567 = vmatprep.subr.bf16.mxu1 %v2968_v0  ;;  %v3136_v29 = vpack.c.bf16 %v651_v26, %v644_v25  ;;  %v721_v25 = vand.u32 4294901760, %v720_v23  ;;  %v3622_v26 = vand.u32 4294901760, %v3112_v12  ;;  %v2619_v23 = vpack.c.bf16 %v3100_v4, %v3098_v3 }
  0x59   :  { %v3640_v3 = vand.u32 4294901760, %v3112_v12  ;;  %v3641_v4 = vand.u32 4294901760, %v3114_v13 }
  0x5a   :  { %v2601_v32 = vpack.c.bf16 %v721_v25, %v714_v24  ;;  %v727_v33 = vsub.f32 %v3112_v12, %v3622_v26  ;;  %v2622_v24 = vpack.c.bf16 %v3104_v8, %v3102_v7  ;;  %v2625_v25 = vpack.c.bf16 %v3108_v10, %v3106_v9  ;;  %v1198_v10 = vld [vmem:[#allocation6 + $0xb8] sm:$0xff] }
  0x5b   :  { %2569 = vmatpush3.bf16.msra.mxu1 %v3078_v43  ;;  %v3642_v7 = vand.u32 4294901760, %v3119_v20  ;;  %v1200_v20 = vld [vmem:[#allocation6 + $0xc8] sm:$0xff] }
  0x5c   :  { %2570 = vmatprep.subr.bf16.mxu1 %v2968_v0  ;;  %v728_v41 = vand.u32 4294901760, %v727_v33  ;;  %v2628_v33 = vpack.c.bf16 %v3114_v13, %v3112_v12  ;;  %v1233_v12 = vand.u32 4294901760, %v1198_v10  ;;  %v1199_v13 = vld [vmem:[#allocation6 + $0xc0] sm:$0xff] }
  0x5e   :  { %v2604_v50 = vpack.c.bf16 %v735_v42, %v728_v41  ;;  %v60_v41 = vlaneseq }
  0x5f   :  { %2572 = vmatpush3.bf16.msra.mxu1 %v3082_v48 }
  0x60   :  { %2573 = vmatprep.subr.bf16.mxu1 %v2968_v0  ;;  %v3212_v42 = vshrl.u32 %v60_v41, 7 }
  0x62   :  { %v62_v51 = vsub.s32 0, %v3212_v42 }
  0x63   :  { %2575 = vmatpush3.bf16.msra.mxu1 %v3086_v53 }
  0x64   :  { %2576 = vmatprep.subr.bf16.mxu1 %v2968_v0  ;;  %v63_v45 = vrot.slane %v3218_v52, %v62_v51  ;;  %v1205_v51 = vld [vmem:[#allocation6 + $0xf0] sm:$0xff] }
  0x67   :  { %2578 = vmatpush3.bf16.msra.mxu1 %v3090_v58 }
  0x68   :  { %2579 = vmatprep.subr.bf16.mxu1 %v2968_v0 }
  0x6b   :  { %2581 = vmatpush3.bf16.msra.mxu1 %v3110_v11 }
  0x6c   :  { %2582 = vmatprep.subr.bf16.mxu1 %v2968_v0 }
  0x6f   :  { %2584 = vmatpush3.bf16.msra.mxu1 %v3122_v21 }
  0x70   :  { %2585 = vmatprep.subr.bf16.mxu1 %v2968_v0 }
 0x121   :  { %v523_v54 = vpop.f32.mrb[0].mxu0 }
 0x122   :  { %v2122_v59 = vpop.f32.mrb[1].mxu0 }
 0x125   :  { %v298_v44 = vpop.f32.mrb[0].mxu1 }
 0x126   :  { %v2849_v30 = vadd.f32 %v298_v44, %v63_v45  ;;  %v2101_v26 = vpop.f32.mrb[1].mxu1 }
 0x128   :  { %v2850_v6 = vadd.f32 %v2849_v30, %v523_v54  ;;  %v1206_v54 = vld [vmem:[#allocation6 + $0xf8] sm:$0xff] }
 0x12a   :  { %2889 = vtanh.f32 %v2850_v6 }
 0x134   :  { %v2890_v5 = vpop.eup %2889 }
 0x135   :  { %v3221_v56 = vand.u32 4294901760, %v2890_v5 }
 0x137   :  { %v3224_v41 = vsub.f32 %v2890_v5, %v3221_v56  ;;  %v1194_v5 = vld [vmem:[#allocation6 + $0x98] sm:$0xff] }
 0x139   :  { %v631_v55 = vand.u32 4294901760, %v3224_v41 }
 0x13b   :  { %v632_v47 = vsub.f32 %v3224_v41, %v631_v55 }
 0x13d   :  { %v633_v59 = vand.u32 4294901760, %v632_v47  ;;  %v1193_v47 = vld [vmem:[#allocation6 + $0x90] sm:$0xff] }
 0x13e   :  { %v1218_v6 = vand.u32 4294901760, %v1193_v47 }
 0x13f   :  { %2156 = vmatmul.mubr.f32.vlgmr.msra.gmra.mrb[2].mxu1 %v633_v59 }
 0x140   :  { %2587 = vmatpush3.bf16.msra.mxu1 %v3136_v29  ;;  %2190 = vmatprep.mubr.msk.f32.mxu1 %vm2969_vm0, %v2970_v1  ;;  %v1191_v29 = vld [vmem:[#allocation6 + $0x80] sm:$0xff]  ;;  %v3253_v44 = vsub.f32 %v1193_v47, %v1218_v6 }
 0x141   :  { %2588 = vmatprep.subr.bf16.mxu1 %v2968_v0 }
 0x144   :  { %2590 = vmatpush3.bf16.msra.mxu1 %v3146_v40  ;;  %v1192_v40 = vld [vmem:[#allocation6 + $0x88] sm:$0xff] }
 0x145   :  { %2591 = vmatprep.subr.bf16.mxu1 %v2968_v0 }
 0x148   :  { %2593 = vmatpush3.bf16.msra.mxu1 %v3156_v49  ;;  %v1212_v49 = vand.u32 4294901760, %v1191_v29 }
 0x149   :  { %2594 = vmatprep.subr.bf16.mxu1 %v2968_v0 }
 0x14a   :  { %v3249_v30 = vsub.f32 %v1191_v29, %v1212_v49 }
 0x14c   :  { %2596 = vmatpush3.bf16.msra.mxu1 %v2595_v57  ;;  %v1215_v57 = vand.u32 4294901760, %v1192_v40 }
 0x14d   :  { %2597 = vmatprep.subr.bf16.mxu1 %v2968_v0 }
 0x14e   :  { %v3247_v26 = vpack.c.bf16 %v1215_v57, %v1212_v49 }
 0x150   :  { %2599 = vmatpush3.bf16.msra.mxu1 %v2598_v14  ;;  %v1221_v14 = vand.u32 4294901760, %v1194_v5  ;;  %2707 = vmatpush3.bf16.msra.mxu0 %v3247_v26 }
 0x151   :  { %2600 = vmatprep.subr.bf16.mxu1 %v2968_v0  ;;  %2708 = vmatprep.subr.bf16.mxu0 %v2968_v0 }
 0x152   :  { %v3255_v45 = vsub.f32 %v1194_v5, %v1221_v14 }
 0x154   :  { %2602 = vmatpush3.bf16.msra.mxu1 %v2601_v32  ;;  %v3251_v32 = vsub.f32 %v1192_v40, %v1215_v57  ;;  %v3394_v40 = vsub.f32 %v1198_v10, %v1233_v12 }
 0x155   :  { %2603 = vmatprep.subr.bf16.mxu1 %v2968_v0 }
 0x156   :  { %v1312_v18 = vand.u32 4294901760, %v3251_v32 }
 0x158   :  { %2605 = vmatpush3.bf16.msra.mxu1 %v2604_v50  ;;  %v3258_v50 = vpack.c.bf16 %v1221_v14, %v1218_v6 }
 0x159   :  { %2606 = vmatprep.subr.bf16.mxu1 %v2968_v0 }
 0x15a   :  { %2710 = vmatpush3.bf16.msra.mxu0 %v3258_v50 }
 0x15b   :  { %2711 = vmatprep.subr.bf16.mxu0 %v2968_v0 }
 0x15c   :  { %2608 = vmatpush3.bf16.msra.mxu1 %v2607_v60  ;;  %v2658_v60 = vpack.c.bf16 %v649_v19, %v642_v16  ;;  %v3637_v16 = vand.u32 4294901760, %v3104_v8  ;;  %v3643_v8 = vand.u32 4294901760, %v3124_v22  ;;  %v1239_v22 = vand.u32 4294901760, %v1200_v20 }
 0x15d   :  { %2609 = vmatprep.subr.bf16.mxu1 %v2968_v0 }
 0x15e   :  { %v2670_v19 = vpack.c.bf16 %v3637_v16, %v3636_v38  ;;  %v2679_v35 = vpack.c.bf16 %v3643_v8, %v3642_v7  ;;  %v3399_v49 = vsub.f32 %v1200_v20, %v1239_v22 }
 0x15f   :  { %2191 = vmatmul.mubr.f32.vlgmr.msra.gmra.mrb[2].mxu1 %v3221_v56 }
 0x160   :  { %2611 = vmatpush3.bf16.msra.mxu1 %v2610_v61  ;;  %2225 = vmatprep.mubr.msk.f32.mxu1 %vm2969_vm0, %v2970_v1  ;;  %v2661_v61 = vpack.c.bf16 %v663_v28, %v656_v27  ;;  %v2673_v27 = vpack.c.bf16 %v3639_v2, %v3638_v63  ;;  %v2676_v28 = vpack.c.bf16 %v3641_v4, %v3640_v3  ;;  %v1319_v2 = vand.u32 4294901760, %v3253_v44 }
 0x161   :  { %2612 = vmatprep.subr.bf16.mxu1 %v2968_v0  ;;  %v1313_v63 = vsub.f32 %v3251_v32, %v1312_v18 }
 0x163   :  { %v1314_v4 = vand.u32 4294901760, %v1313_v63 }
 0x164   :  { %2614 = vmatpush3.bf16.msra.mxu1 %v2613_v62 }
 0x165   :  { %2615 = vmatprep.subr.bf16.mxu1 %v2968_v0 }
 0x168   :  { %2617 = vmatpush3.bf16.msra.mxu1 %v2616_v15 }
 0x169   :  { %2618 = vmatprep.subr.bf16.mxu1 %v2968_v0 }
 0x16c   :  { %2620 = vmatpush3.bf16.msra.mxu1 %v2619_v23  ;;  %v1203_v23 = vld [vmem:[#allocation6 + $0xe0] sm:$0xff] }
 0x16d   :  { %2621 = vmatprep.subr.bf16.mxu1 %v2968_v0 }
 0x170   :  { %2623 = vmatpush3.bf16.msra.mxu1 %v2622_v24  ;;  %v1204_v24 = vld [vmem:[#allocation6 + $0xe8] sm:$0xff] }
 0x171   :  { %2624 = vmatprep.subr.bf16.mxu1 %v2968_v0 }
 0x174   :  { %2626 = vmatpush3.bf16.msra.mxu1 %v2625_v25  ;;  %v1248_v25 = vand.u32 4294901760, %v1203_v23 }
 0x175   :  { %2627 = vmatprep.subr.bf16.mxu1 %v2968_v0 }
 0x176   :  { %v3406_v6 = vsub.f32 %v1203_v23, %v1248_v25  ;;  %v3634_v23 = vand.u32 4294901760, %v3399_v49 }
 0x178   :  { %2629 = vmatpush3.bf16.msra.mxu1 %v2628_v33  ;;  %v1251_v33 = vand.u32 4294901760, %v1204_v24 }
 0x179   :  { %2630 = vmatprep.subr.bf16.mxu1 %v2968_v0 }
 0x17a   :  { %v3408_v14 = vsub.f32 %v1204_v24, %v1251_v33 }
 0x17c   :  { %2632 = vmatpush3.bf16.msra.mxu1 %v2631_v34  ;;  %v3386_v34 = vpack.c.bf16 %v1251_v33, %v1248_v25  ;;  %v1369_v33 = vsub.f32 %v3399_v49, %v3634_v23 }
 0x17d   :  { %2633 = vmatprep.subr.bf16.mxu1 %v2968_v0 }
 0x17f   :  { %2226 = vmatmul.mubr.f32.vlgmr.msra.gmra.mrb[2].mxu1 %v3224_v41 }
 0x180   :  { %2635 = vmatpush3.bf16.msra.mxu1 %v3062_v31  ;;  %2260 = vmatprep.mubr.msk.f32.mxu1 %vm2969_vm0, %v2970_v1 }
 0x181   :  { %2636 = vmatprep.subr.bf16.mxu1 %v2968_v0 }
 0x184   :  { %2638 = vmatpush3.bf16.msra.mxu1 %v3070_v36 }
 0x185   :  { %2639 = vmatprep.subr.bf16.mxu1 %v2968_v0 }
 0x188   :  { %2641 = vmatpush3.bf16.msra.mxu1 %v3078_v43 }
 0x189   :  { %2642 = vmatprep.subr.bf16.mxu1 %v2968_v0 }
 0x18c   :  { %2644 = vmatpush3.bf16.msra.mxu1 %v3082_v48 }
 0x18d   :  { %2645 = vmatprep.subr.bf16.mxu1 %v2968_v0 }
 0x190   :  { %2647 = vmatpush3.bf16.msra.mxu1 %v3086_v53 }
 0x191   :  { %2648 = vmatprep.subr.bf16.mxu1 %v2968_v0 }
 0x194   :  { %2650 = vmatpush3.bf16.msra.mxu1 %v3090_v58 }
 0x195   :  { %2651 = vmatprep.subr.bf16.mxu1 %v2968_v0 }
 0x198   :  { %2653 = vmatpush3.bf16.msra.mxu1 %v3110_v11 }
 0x199   :  { %2654 = vmatprep.subr.bf16.mxu1 %v2968_v0 }
 0x19c   :  { %2656 = vmatpush3.bf16.msra.mxu1 %v3122_v21 }
 0x19d   :  { %2657 = vmatprep.subr.bf16.mxu1 %v2968_v0 }
 0x19f   :  { %2261 = vmatmul.mubr.f32.vlgmr.msra.gmra.mrb[2].mxu1 %v631_v55  ;;  %v1202_v55 = vld [vmem:[#allocation6 + $0xd8] sm:$0xff] }
 0x1a0   :  { %2659 = vmatpush3.bf16.msra.mxu1 %v2658_v60  ;;  %2295 = vmatprep.mubr.msk.f32.mxu1 %vm2969_vm0, %v2970_v1  ;;  %v1245_v62 = vand.u32 4294901760, %v1202_v55  ;;  %v1254_v60 = vand.u32 4294901760, %v1205_v51 }
 0x1a1   :  { %2660 = vmatprep.subr.bf16.mxu1 %v2968_v0 }
 0x1a2   :  { %v3403_v5 = vsub.f32 %v1202_v55, %v1245_v62  ;;  %v3414_v38 = vsub.f32 %v1205_v51, %v1254_v60 }
 0x1a4   :  { %2662 = vmatpush3.bf16.msra.mxu1 %v2661_v61  ;;  %v1257_v61 = vand.u32 4294901760, %v1206_v54 }
 0x1a5   :  { %2663 = vmatprep.subr.bf16.mxu1 %v2968_v0 }
 0x1a6   :  { %v3416_v16 = vsub.f32 %v1206_v54, %v1257_v61  ;;  %v1370_v54 = vand.u32 4294901760, %v1369_v33 }
 0x1a8   :  { %2665 = vmatpush3.bf16.msra.mxu1 %v2664_v17  ;;  %v1305_v17 = vand.u32 4294901760, %v3249_v30 }
 0x1a9   :  { %2666 = vmatprep.subr.bf16.mxu1 %v2968_v0 }
 0x1ac   :  { %2668 = vmatpush3.bf16.msra.mxu1 %v2667_v37  ;;  %v3412_v37 = vpack.c.bf16 %v1257_v61, %v1254_v60  ;;  %v3632_v61 = vand.u32 4294901760, %v3403_v5 }
 0x1ad   :  { %2669 = vmatprep.subr.bf16.mxu1 %v2968_v0 }
 0x1b0   :  { %2671 = vmatpush3.bf16.msra.mxu1 %v2670_v19  ;;  %v1306_v19 = vsub.f32 %v3249_v30, %v1305_v17 }
 0x1b1   :  { %2672 = vmatprep.subr.bf16.mxu1 %v2968_v0 }
 0x1b2   :  { %v1307_v3 = vand.u32 4294901760, %v1306_v19 }
 0x1b4   :  { %2674 = vmatpush3.bf16.msra.mxu1 %v2673_v27  ;;  %v1326_v27 = vand.u32 4294901760, %v3255_v45  ;;  %v3434_v8 = vpack.c.bf16 %v1314_v4, %v1307_v3  ;;  %v1383_v3 = vsub.f32 %v3403_v5, %v3632_v61 }
 0x1b5   :  { %2675 = vmatprep.subr.bf16.mxu1 %v2968_v0 }
 0x1b6   :  { %v1327_v7 = vsub.f32 %v3255_v45, %v1326_v27 }
 0x1b8   :  { %2677 = vmatpush3.bf16.msra.mxu1 %v2676_v28  ;;  %v1320_v28 = vsub.f32 %v3253_v44, %v1319_v2 }
 0x1b9   :  { %2678 = vmatprep.subr.bf16.mxu1 %v2968_v0 }
 0x1bc   :  { %2680 = vmatpush3.bf16.msra.mxu1 %v2679_v35  ;;  %v1321_v35 = vand.u32 4294901760, %v1320_v28  ;;  %v1384_v28 = vand.u32 4294901760, %v1383_v3  ;;  %v2757_v3 = vpack.c.bf16 %v3255_v45, %v3253_v44  ;;  %v3644_v44 = vand.u32 4294901760, %v3399_v49 }
 0x1bd   :  { %2681 = vmatprep.subr.bf16.mxu1 %v2968_v0 }
 0x1bf   :  { %2296 = vmatmul.mubr.f32.vlgmr.msra.gmra.mrb[2].mxu1 %v3221_v56 }
 0x1c0   :  { %2683 = vmatpush3.bf16.msra.mxu1 %v3062_v31  ;;  %2330 = vmatprep.mubr.msk.f32.mxu1 %vm2969_vm0, %v2970_v1  ;;  %v1195_v31 = vld [vmem:[#allocation6 + $0xa0] sm:$0xff] }
 0x1c1   :  { %2684 = vmatprep.subr.bf16.mxu1 %v2968_v0 }
 0x1c4   :  { %2686 = vmatpush3.bf16.msra.mxu1 %v3070_v36  ;;  %v1196_v36 = vld [vmem:[#allocation6 + $0xa8] sm:$0xff] }
 0x1c5   :  { %2687 = vmatprep.subr.bf16.mxu1 %v2968_v0 }
 0x1c8   :  { %2689 = vmatpush3.bf16.msra.mxu1 %v3078_v43  ;;  %v1224_v43 = vand.u32 4294901760, %v1195_v31 }
 0x1c9   :  { %2690 = vmatprep.subr.bf16.mxu1 %v2968_v0 }
 0x1ca   :  { %v3388_v41 = vsub.f32 %v1195_v31, %v1224_v43  ;;  %v1328_v31 = vand.u32 4294901760, %v1327_v7  ;;  %v3631_v7 = vand.u32 4294901760, %v3406_v6 }
 0x1cc   :  { %2692 = vmatpush3.bf16.msra.mxu1 %v3082_v48  ;;  %v1227_v48 = vand.u32 4294901760, %v1196_v36 }
 0x1cd   :  { %2693 = vmatprep.subr.bf16.mxu1 %v2968_v0 }
 0x1ce   :  { %v3370_v9 = vpack.c.bf16 %v1227_v48, %v1224_v43  ;;  %v3390_v59 = vsub.f32 %v1196_v36, %v1227_v48  ;;  %v1333_v36 = vand.u32 4294901760, %v3388_v41  ;;  %v3438_v48 = vpack.c.bf16 %v1328_v31, %v1321_v35 }
 0x1cf   :  { %v3630_v35 = vand.u32 4294901760, %v3408_v14 }
 0x1d0   :  { %2695 = vmatpush3.bf16.msra.mxu1 %v3086_v53  ;;  %v1197_v53 = vld [vmem:[#allocation6 + $0xb0] sm:$0xff]  ;;  %2713 = vmatpush3.bf16.msra.mxu0 %v3370_v9  ;;  %v1340_v43 = vand.u32 4294901760, %v3390_v59 }
 0x1d1   :  { %2696 = vmatprep.subr.bf16.mxu1 %v2968_v0  ;;  %2714 = vmatprep.subr.bf16.mxu0 %v2968_v0 }
 0x1d2   :  { %v1341_v10 = vsub.f32 %v3390_v59, %v1340_v43 }
 0x1d4   :  { %2698 = vmatpush3.bf16.msra.mxu1 %v3090_v58  ;;  %v1230_v58 = vand.u32 4294901760, %v1197_v53  ;;  %v1342_v20 = vand.u32 4294901760, %v1341_v10  ;;  %v1397_v10 = vsub.f32 %v3408_v14, %v3630_v35 }
 0x1d5   :  { %2699 = vmatprep.subr.bf16.mxu1 %v2968_v0 }
 0x1d6   :  { %v3392_v29 = vsub.f32 %v1197_v53, %v1230_v58  ;;  %v1334_v53 = vsub.f32 %v3388_v41, %v1333_v36 }
 0x1d8   :  { %2701 = vmatpush3.bf16.msra.mxu1 %v3110_v11  ;;  %v3374_v11 = vpack.c.bf16 %v1233_v12, %v1230_v58  ;;  %v1335_v58 = vand.u32 4294901760, %v1334_v53  ;;  %v1347_v12 = vand.u32 4294901760, %v3392_v29  ;;  %v1390_v53 = vsub.f32 %v3406_v6, %v3631_v7 }
 0x1d9   :  { %2702 = vmatprep.subr.bf16.mxu1 %v2968_v0 }
 0x1da   :  { %2716 = vmatpush3.bf16.msra.mxu0 %v3374_v11 }
 0x1db   :  { %2717 = vmatprep.subr.bf16.mxu0 %v2968_v0 }
 0x1dc   :  { %2704 = vmatpush3.bf16.msra.mxu1 %v3122_v21  ;;  %v1236_v21 = vand.u32 4294901760, %v1199_v13 }
 0x1de   :  { %v3378_v39 = vpack.c.bf16 %v1239_v22, %v1236_v21  ;;  %v3397_v47 = vsub.f32 %v1199_v13, %v1236_v21  ;;  %v1354_v13 = vand.u32 4294901760, %v3394_v40  ;;  %v1348_v21 = vsub.f32 %v3392_v29, %v1347_v12 }
 0x1df   :  { %2331 = vmatmul.mubr.f32.vlgmr.msra.gmra.mrb[2].mxu1 %v3221_v56  ;;  %v1242_v56 = vand.u32 4294901760, %v1201_v46 }
 0x1e0   :  { %2719 = vmatpush3.bf16.msra.mxu0 %v3378_v39  ;;  %v1355_v22 = vsub.f32 %v3394_v40, %v1354_v13  ;;  %v1349_v55 = vand.u32 4294901760, %v1348_v21  ;;  %v3629_v21 = vand.u32 4294901760, %v3414_v38 }
 0x1e1   :  { %2720 = vmatprep.subr.bf16.mxu0 %v2968_v0  ;;  %v3382_v15 = vpack.c.bf16 %v1245_v62, %v1242_v56  ;;  %v3401_v57 = vsub.f32 %v1201_v46, %v1242_v56  ;;  %v2736_v46 = vpack.c.bf16 %v1342_v20, %v1335_v58  ;;  %v1361_v62 = vand.u32 4294901760, %v3397_v47 }
 0x1e2   :  { %v1356_v56 = vand.u32 4294901760, %v1355_v22  ;;  %v1391_v58 = vand.u32 4294901760, %v1390_v53  ;;  %v1398_v20 = vand.u32 4294901760, %v1397_v10  ;;  %v3628_v22 = vand.u32 4294901760, %v3416_v16 }
 0x1e3   :  { %v1362_v25 = vsub.f32 %v3397_v47, %v1361_v62  ;;  %v3633_v60 = vand.u32 4294901760, %v3401_v57  ;;  %v2766_v53 = vpack.c.bf16 %v3399_v49, %v3397_v47  ;;  %v2769_v10 = vpack.c.bf16 %v3403_v5, %v3401_v57 }
 0x1e4   :  { %2722 = vmatpush3.bf16.msra.mxu0 %v3382_v15  ;;  %v2739_v24 = vpack.c.bf16 %v1356_v56, %v1349_v55  ;;  %v2748_v55 = vpack.c.bf16 %v1398_v20, %v1391_v58  ;;  %v1404_v56 = vsub.f32 %v3414_v38, %v3629_v21  ;;  %v2772_v58 = vpack.c.bf16 %v3408_v14, %v3406_v6 }
 0x1e5   :  { %2723 = vmatprep.subr.bf16.mxu0 %v2968_v0  ;;  %v1363_v51 = vand.u32 4294901760, %v1362_v25  ;;  %v1376_v63 = vsub.f32 %v3401_v57, %v3633_v60  ;;  %v1411_v25 = vsub.f32 %v3416_v16, %v3628_v22  ;;  %v2775_v20 = vpack.c.bf16 %v3416_v16, %v3414_v38 }
 0x1e6   :  { %v1405_v33 = vand.u32 4294901760, %v1404_v56  ;;  %v546_v56 = vsub.s32 1, %v3212_v42  ;;  %v2814_v45 = vpack.c.bf16 %v3644_v44, %v1361_v62  ;;  %v3649_v47 = vand.u32 4294901760, %v3414_v38 }
 0x1e7   :  { %v2742_v19 = vpack.c.bf16 %v1370_v54, %v1363_v51  ;;  %v1377_v4 = vand.u32 4294901760, %v1376_v63  ;;  %v1412_v51 = vand.u32 4294901760, %v1411_v25  ;;  %v2754_v63 = vpack.c.bf16 %v3251_v32, %v3249_v30 }
 0x1e8   :  { %2725 = vmatpush3.bf16.msra.mxu0 %v3386_v34  ;;  %v547_v25 = vrot.slane %v3218_v52, %v546_v56  ;;  %v2808_v30 = vpack.c.bf16 %v1340_v43, %v1333_v36  ;;  %v2811_v32 = vpack.c.bf16 %v1354_v13, %v1347_v12  ;;  %v3650_v49 = vand.u32 4294901760, %v3416_v16 }
 0x1e9   :  { %2726 = vmatprep.subr.bf16.mxu0 %v2968_v0  ;;  %v2745_v31 = vpack.c.bf16 %v1384_v28, %v1377_v4  ;;  %v2751_v54 = vpack.c.bf16 %v1412_v51, %v1405_v33  ;;  %v2760_v4 = vpack.c.bf16 %v3390_v59, %v3388_v41  ;;  %v2763_v28 = vpack.c.bf16 %v3394_v40, %v3392_v29 }
 0x1ea   :  { %v3645_v41 = vand.u32 4294901760, %v3401_v57  ;;  %v3646_v59 = vand.u32 4294901760, %v3403_v5  ;;  %v3647_v29 = vand.u32 4294901760, %v3406_v6  ;;  %v3648_v40 = vand.u32 4294901760, %v3408_v14 }
 0x1ec   :  { %2728 = vmatpush3.bf16.msra.mxu0 %v3412_v37 }
 0x1ed   :  { %2729 = vmatprep.subr.bf16.mxu0 %v2968_v0 }
 0x2b2   :  { %v1185_v33 = vpop.f32.mrb[2].mxu1 }
 0x2b3   :  { %v2851_v51 = vadd.f32 %v1185_v33, %v547_v25  ;;  %v2332_v22 = vpop.f32.mrb[3].mxu1 }
 0x2b5   :  { %2891 = vtanh.f32 %v2851_v51 }
 0x2bf   :  { %v2892_v21 = vpop.eup %2891 }
 0x2c0   :  { %v3504_v35 = vand.u32 4294901760, %v2892_v21 }
 0x2c2   :  { %v1293_v7 = vsub.f32 %v2892_v21, %v3504_v35 }
 0x2c4   :  { %v1294_v61 = vand.u32 4294901760, %v1293_v7 }
 0x2c6   :  { %v1295_v60 = vsub.f32 %v1293_v7, %v1294_v61 }
 0x2c8   :  { %v1296_v23 = vand.u32 4294901760, %v1295_v60 }
 0x2ca   :  { %2366 = vmatmul.mubr.f32.vlgmr.msra.gmra.mrb[2].mxu0 %v1296_v23 }
 0x2cb   :  { %2731 = vmatpush3.bf16.msra.mxu0 %v3434_v8  ;;  %2400 = vmatprep.mubr.msk.f32.mxu0 %vm2969_vm0, %v2970_v1  ;;  %v2802_v8 = vpack.c.bf16 %v1312_v18, %v1305_v17  ;;  %v2817_v17 = vpack.c.bf16 %v3646_v59, %v3645_v41  ;;  %v2820_v18 = vpack.c.bf16 %v3648_v40, %v3647_v29 }
 0x2cc   :  { %2732 = vmatprep.subr.bf16.mxu0 %v2968_v0 }
 0x2cf   :  { %2734 = vmatpush3.bf16.msra.mxu0 %v3438_v48  ;;  %v2805_v48 = vpack.c.bf16 %v1326_v27, %v1319_v2  ;;  %v2823_v2 = vpack.c.bf16 %v3650_v49, %v3649_v47 }
 0x2d0   :  { %2735 = vmatprep.subr.bf16.mxu0 %v2968_v0 }
 0x2d3   :  { %2737 = vmatpush3.bf16.msra.mxu0 %v2736_v46 }
 0x2d4   :  { %2738 = vmatprep.subr.bf16.mxu0 %v2968_v0 }
 0x2d7   :  { %2740 = vmatpush3.bf16.msra.mxu0 %v2739_v24 }
 0x2d8   :  { %2741 = vmatprep.subr.bf16.mxu0 %v2968_v0 }
 0x2db   :  { %2743 = vmatpush3.bf16.msra.mxu0 %v2742_v19 }
 0x2dc   :  { %2744 = vmatprep.subr.bf16.mxu0 %v2968_v0 }
 0x2df   :  { %2746 = vmatpush3.bf16.msra.mxu0 %v2745_v31 }
 0x2e0   :  { %2747 = vmatprep.subr.bf16.mxu0 %v2968_v0 }
 0x2e3   :  { %2749 = vmatpush3.bf16.msra.mxu0 %v2748_v55 }
 0x2e4   :  { %2750 = vmatprep.subr.bf16.mxu0 %v2968_v0 }
 0x2e7   :  { %2752 = vmatpush3.bf16.msra.mxu0 %v2751_v54 }
 0x2e8   :  { %2753 = vmatprep.subr.bf16.mxu0 %v2968_v0 }
 0x2ea   :  { %2401 = vmatmul.mubr.f32.vlgmr.msra.gmra.mrb[2].mxu0 %v3504_v35 }
 0x2eb   :  { %2755 = vmatpush3.bf16.msra.mxu0 %v2754_v63  ;;  %2435 = vmatprep.mubr.msk.f32.mxu0 %vm2969_vm0, %v2970_v1 }
 0x2ec   :  { %2756 = vmatprep.subr.bf16.mxu0 %v2968_v0 }
 0x2ef   :  { %2758 = vmatpush3.bf16.msra.mxu0 %v2757_v3 }
 0x2f0   :  { %2759 = vmatprep.subr.bf16.mxu0 %v2968_v0 }
 0x2f3   :  { %2761 = vmatpush3.bf16.msra.mxu0 %v2760_v4 }
 0x2f4   :  { %2762 = vmatprep.subr.bf16.mxu0 %v2968_v0 }
 0x2f7   :  { %2764 = vmatpush3.bf16.msra.mxu0 %v2763_v28 }
 0x2f8   :  { %2765 = vmatprep.subr.bf16.mxu0 %v2968_v0 }
 0x2fb   :  { %2767 = vmatpush3.bf16.msra.mxu0 %v2766_v53 }
 0x2fc   :  { %2768 = vmatprep.subr.bf16.mxu0 %v2968_v0 }
 0x2ff   :  { %2770 = vmatpush3.bf16.msra.mxu0 %v2769_v10 }
 0x300   :  { %2771 = vmatprep.subr.bf16.mxu0 %v2968_v0 }
 0x303   :  { %2773 = vmatpush3.bf16.msra.mxu0 %v2772_v58 }
 0x304   :  { %2774 = vmatprep.subr.bf16.mxu0 %v2968_v0 }
 0x307   :  { %2776 = vmatpush3.bf16.msra.mxu0 %v2775_v20 }
 0x308   :  { %2777 = vmatprep.subr.bf16.mxu0 %v2968_v0 }
 0x30a   :  { %2436 = vmatmul.mubr.f32.vlgmr.msra.gmra.mrb[2].mxu0 %v1293_v7 }
 0x30b   :  { %2779 = vmatpush3.bf16.msra.mxu0 %v3247_v26  ;;  %2470 = vmatprep.mubr.msk.f32.mxu0 %vm2969_vm0, %v2970_v1 }
 0x30c   :  { %2780 = vmatprep.subr.bf16.mxu0 %v2968_v0 }
 0x30f   :  { %2782 = vmatpush3.bf16.msra.mxu0 %v3258_v50 }
 0x310   :  { %2783 = vmatprep.subr.bf16.mxu0 %v2968_v0 }
 0x313   :  { %2785 = vmatpush3.bf16.msra.mxu0 %v3370_v9 }
 0x314   :  { %2786 = vmatprep.subr.bf16.mxu0 %v2968_v0 }
 0x317   :  { %2788 = vmatpush3.bf16.msra.mxu0 %v3374_v11 }
 0x318   :  { %2789 = vmatprep.subr.bf16.mxu0 %v2968_v0 }
 0x31b   :  { %2791 = vmatpush3.bf16.msra.mxu0 %v3378_v39 }
 0x31c   :  { %2792 = vmatprep.subr.bf16.mxu0 %v2968_v0 }
 0x31f   :  { %2794 = vmatpush3.bf16.msra.mxu0 %v3382_v15 }
 0x320   :  { %2795 = vmatprep.subr.bf16.mxu0 %v2968_v0 }
 0x323   :  { %2797 = vmatpush3.bf16.msra.mxu0 %v3386_v34 }
 0x324   :  { %2798 = vmatprep.subr.bf16.mxu0 %v2968_v0 }
 0x327   :  { %2800 = vmatpush3.bf16.msra.mxu0 %v3412_v37 }
 0x328   :  { %2801 = vmatprep.subr.bf16.mxu0 %v2968_v0 }
 0x32a   :  { %2471 = vmatmul.mubr.f32.vlgmr.msra.gmra.mrb[2].mxu0 %v1294_v61 }
 0x32b   :  { %2803 = vmatpush3.bf16.msra.mxu0 %v2802_v8  ;;  %2505 = vmatprep.mubr.msk.f32.mxu0 %vm2969_vm0, %v2970_v1 }
 0x32c   :  { %2804 = vmatprep.subr.bf16.mxu0 %v2968_v0 }
 0x32f   :  { %2806 = vmatpush3.bf16.msra.mxu0 %v2805_v48 }
 0x330   :  { %2807 = vmatprep.subr.bf16.mxu0 %v2968_v0 }
 0x333   :  { %2809 = vmatpush3.bf16.msra.mxu0 %v2808_v30 }
 0x334   :  { %2810 = vmatprep.subr.bf16.mxu0 %v2968_v0 }
 0x337   :  { %2812 = vmatpush3.bf16.msra.mxu0 %v2811_v32 }
 0x338   :  { %2813 = vmatprep.subr.bf16.mxu0 %v2968_v0 }
 0x33b   :  { %2815 = vmatpush3.bf16.msra.mxu0 %v2814_v45 }
 0x33c   :  { %2816 = vmatprep.subr.bf16.mxu0 %v2968_v0 }
 0x33f   :  { %2818 = vmatpush3.bf16.msra.mxu0 %v2817_v17 }
 0x340   :  { %2819 = vmatprep.subr.bf16.mxu0 %v2968_v0 }
 0x343   :  { %2821 = vmatpush3.bf16.msra.mxu0 %v2820_v18 }
 0x344   :  { %2822 = vmatprep.subr.bf16.mxu0 %v2968_v0 }
 0x347   :  { %2824 = vmatpush3.bf16.msra.mxu0 %v2823_v2 }
 0x348   :  { %2825 = vmatprep.subr.bf16.mxu0 %v2968_v0 }
 0x34a   :  { %2506 = vmatmul.mubr.f32.vlgmr.msra.gmra.mrb[2].mxu0 %v3504_v35 }
 0x34b   :  { %2827 = vmatpush3.bf16.msra.mxu0 %v3247_v26  ;;  %2540 = vmatprep.mubr.msk.f32.mxu0 %vm2969_vm0, %v2970_v1  ;;  %v1209_v1 = vsub.s32 2, %v3212_v42 }
 0x34c   :  { %2828 = vmatprep.subr.bf16.mxu0 %v2968_v0 }
 0x34d   :  { %v1210_v26 = vrot.slane %v3218_v52, %v1209_v1 }
 0x34f   :  { %2830 = vmatpush3.bf16.msra.mxu0 %v3258_v50 }
 0x350   :  { %2831 = vmatprep.subr.bf16.mxu0 %v2968_v0 }
 0x353   :  { %2833 = vmatpush3.bf16.msra.mxu0 %v3370_v9 }
 0x354   :  { %2834 = vmatprep.subr.bf16.mxu0 %v2968_v0 }
 0x357   :  { %2836 = vmatpush3.bf16.msra.mxu0 %v3374_v11 }
 0x358   :  { %2837 = vmatprep.subr.bf16.mxu0 %v2968_v0 }
 0x35b   :  { %2839 = vmatpush3.bf16.msra.mxu0 %v3378_v39 }
 0x35c   :  { %2840 = vmatprep.subr.bf16.mxu0 %v2968_v0 }
 0x35f   :  { %2842 = vmatpush3.bf16.msra.mxu0 %v3382_v15 }
 0x360   :  { %2843 = vmatprep.subr.bf16.mxu0 %v2968_v0 }
 0x363   :  { %2845 = vmatpush3.bf16.msra.mxu0 %v3386_v34 }
 0x364   :  { %2846 = vmatprep.subr.bf16.mxu0 %v2968_v0 }
 0x367   :  { %2848 = vmatpush3.bf16.msra.mxu0 %v3412_v37 }
 0x36a   :  { %2541 = vmatmul.mubr.f32.vlgmr.msra.gmra.mrb[2].mxu0 %v3504_v35 }
 0x43d   :  { %v1848_v50 = vpop.f32.mrb[2].mxu0 }
 0x43e   :  { %v2852_v9 = vadd.f32 %v1848_v50, %v1210_v26  ;;  %v2542_v11 = vpop.f32.mrb[3].mxu0 }
 0x440   :  { %1852 = vst [vmem:[%s3618_s4] sm:$0xff] %v2852_v9 }
 0x441   :  { %1857 = vsyncpa [#allocation3], 1 }
 0x442   :  { %1858 = vsyncpa [#allocation5], 1 }

</bundles_post_ra>
